<compile_context>
chip_gen: v6e
topology: v6e:2x2x1
jax: 0.10.0
libtpu: 0.0.40
codegen_flags: <defaults>
</compile_context>

<pallas_src>
import functools

import jax
import jax.numpy as jnp
from jax import lax
from jax.experimental import pallas as pl
from jax.experimental.pallas import tpu as pltpu

LANE = 128


def _round_up(x, m):
    return (x + m - 1) // m * m


def _net_policy_kernel(obs_ref, h_ref, mask_ref,
                       w_enc_ref, w_rnn_ref, w_head_ref, bias_ref,
                       feat_ref, packed_ref,
                       *, hidden, num_actions, bias_stride):
    obs = obs_ref[...]
    h = h_ref[...]
    mask = mask_ref[...]                                      # (Bt, 1)

    # Static, lane-aligned slices of the packed bias slab.
    b_enc = bias_ref[:, 0:hidden]
    b_rnn = bias_ref[:, bias_stride:bias_stride + hidden]
    b_head = bias_ref[:, 2 * bias_stride:2 * bias_stride + num_actions + 1]

    # --- net: obs encoder + masked recurrent step ---
    x = jnp.dot(obs, w_enc_ref[...], preferred_element_type=jnp.float32) + b_enc
    x = jnp.maximum(x, 0.0)                                   # ReLU (VPU)
    h_masked = h * mask                                       # zero hidden on reset

    # Two MXU dots on static row-slices of the packed RNN slab; avoids a
    # lane-dim concat/relayout of [x | h_masked].
    pre = (jnp.dot(x, w_rnn_ref[0:hidden, :],
                   preferred_element_type=jnp.float32)
           + jnp.dot(h_masked, w_rnn_ref[hidden:2 * hidden, :],
                     preferred_element_type=jnp.float32)
           + b_rnn)
    h_new = jnp.tanh(pre)                                     # EUP
    feat_ref[...] = h_new                                     # features == new rnn hidden

    # --- fused heads: [CategoricalNet logits | CriticHead value] in one matmul ---
    head = jnp.dot(h_new, w_head_ref[...], preferred_element_type=jnp.float32) + b_head
    logits = head[:, 0:num_actions]                           # (Bt, A)
    value = head[:, num_actions:num_actions + 1]              # (Bt, 1)

    # Categorical mode + log_prob(mode)  ( == -log(sum exp(l - max)) ).
    m = jnp.max(logits, axis=-1, keepdims=True)
    lse = jnp.log(jnp.sum(jnp.exp(logits - m), axis=-1, keepdims=True))
    logp = -lse

    idx = lax.broadcasted_iota(jnp.int32, logits.shape, 1)
    action = jnp.min(jnp.where(logits == m, idx, jnp.int32(2 ** 30)),
                     axis=-1, keepdims=True)                  # lowest index on ties
    action_f = action.astype(jnp.float32)                     # exact for small A

    # Lane-dense packed scalar output: col0 = value, col1 = logp, col2 = action.
    col = lax.broadcasted_iota(jnp.int32, packed_ref.shape, 1)
    packed_ref[...] = jnp.where(col == 0, value,
                                jnp.where(col == 1, logp,
                                          jnp.where(col == 2, action_f, 0.0)))


def pack_params(params):
    """One-time packing of per-module weights into DMA-friendly slabs."""
    H = params["w_enc"].shape[1]
    A = params["w_act"].shape[1]
    hp = _round_up(H, LANE)            # lane-aligned bias segment stride
    ap = _round_up(A + 1, LANE)

    w_rnn = jnp.concatenate([params["w_ih"], params["w_hh"]], axis=0)    # (2H, H)
    w_head = jnp.concatenate([params["w_act"], params["w_v"]], axis=1)   # (H, A+1)

    bias = jnp.zeros((1, 2 * hp + ap), jnp.float32)
    bias = bias.at[:, 0:H].set(params["b_enc"])
    bias = bias.at[:, hp:hp + H].set(params["b_rnn"])
    bias = bias.at[:, 2 * hp:2 * hp + A].set(params["b_act"])
    bias = bias.at[:, 2 * hp + A:2 * hp + A + 1].set(params["b_v"])

    return {
        "w_enc": params["w_enc"],      # (OBS, H)
        "w_rnn": w_rnn,                # (2H, H)
        "w_head": w_head,              # (H, A+1)
        "biases": bias,                # (1, 2*hp + ap), lane-aligned segments
    }


def net_policy_act(packed_params, observations, rnn_hidden_states, masks,
                   *, batch_tile=None):
    B, OBS = observations.shape
    H = rnn_hidden_states.shape[-1]
    A = packed_params["w_head"].shape[-1] - 1
    hp = _round_up(H, LANE)                        # must match pack_params
    PACK_W = 128                                   # lane-dense scalar slab width

    bt = batch_tile if batch_tile is not None else (B if B <= 512 else 512)
    assert B % bt == 0, "batch must be divisible by the batch tile"
    n_tiles = B // bt

    kernel = functools.partial(_net_policy_kernel,
                               hidden=H, num_actions=A, bias_stride=hp)

    act_spec = lambda cols: pl.BlockSpec((bt, cols), lambda i: (i, 0))
    const_spec = lambda shape: pl.BlockSpec(shape, lambda i: (0, 0))

    out_shapes = (
        jax.ShapeDtypeStruct((B, H), jnp.float32),        # features / new rnn hidden
        jax.ShapeDtypeStruct((B, PACK_W), jnp.float32),   # packed [value, logp, action]
    )

    feat, packed_out = pl.pallas_call(
        kernel,
        out_shape=out_shapes,
        grid=(n_tiles,),
        in_specs=[
            act_spec(OBS),                                 # observations
            act_spec(H),                                   # rnn hidden
            act_spec(1),                                   # masks
            const_spec(packed_params["w_enc"].shape),      # weight slabs (resident)
            const_spec(packed_params["w_rnn"].shape),
            const_spec(packed_params["w_head"].shape),
            const_spec(packed_params["biases"].shape),
        ],
        out_specs=(
            act_spec(H),
            act_spec(PACK_W),
        ),
        compiler_params=pltpu.CompilerParams(
            dimension_semantics=("parallel",),
        ),
    )(
        observations, rnn_hidden_states, masks,
        packed_params["w_enc"], packed_params["w_rnn"],
        packed_params["w_head"], packed_params["biases"],
    )

    values = packed_out[:, 0:1]
    action_log_probs = packed_out[:, 1:2]
    actions = packed_out[:, 2:3].astype(jnp.int32)

    # Mimics PolicyActionData fields
    return {
        "values": values,
        "actions": actions,
        "action_log_probs": action_log_probs,
        "rnn_hidden_states": feat,
    }


def make_params(key, obs_dim, hidden, num_actions):
    ks = jax.random.split(key, 6)
    s_enc = 1.0 / jnp.sqrt(obs_dim)
    s_hid = 1.0 / jnp.sqrt(hidden)
    return {
        "w_enc": jax.random.normal(ks[0], (obs_dim, hidden), jnp.float32) * s_enc,
        "b_enc": jnp.zeros((1, hidden), jnp.float32),
        "w_ih": jax.random.normal(ks[1], (hidden, hidden), jnp.float32) * s_hid,
        "w_hh": jax.random.normal(ks[2], (hidden, hidden), jnp.float32) * s_hid,
        "b_rnn": jnp.zeros((1, hidden), jnp.float32),
        # CategoricalNet linear (orthogonal-ish small gain in habitat; synthetic here)
        "w_act": jax.random.normal(ks[3], (hidden, num_actions), jnp.float32) * 0.01,
        "b_act": jnp.zeros((1, num_actions), jnp.float32),
        # CriticHead linear
        "w_v": jax.random.normal(ks[4], (hidden, 1), jnp.float32) * s_hid,
        "b_v": jnp.zeros((1, 1), jnp.float32),
    }


def _reference_act(params, obs, h, masks):
    """Pure-JAX reference of the fused act(deterministic=True) path."""
    x = jnp.maximum(obs @ params["w_enc"] + params["b_enc"], 0.0)
    h_new = jnp.tanh(x @ params["w_ih"] + (h * masks) @ params["w_hh"] + params["b_rnn"])
    logits = h_new @ params["w_act"] + params["b_act"]
    value = h_new @ params["w_v"] + params["b_v"]
    action = jnp.argmax(logits, axis=-1, keepdims=True)
    logp = jax.nn.log_softmax(logits, axis=-1)
    logp_at = jnp.take_along_axis(logp, action, axis=-1)
    return value, action.astype(jnp.int32), logp_at, h_new


if __name__ == "__main__":
    B, OBS, HID, A = 8, 32, 32, 4

    key = jax.random.PRNGKey(0)
    k_obs, k_h, k_param = jax.random.split(key, 3)

    observations = jax.random.normal(k_obs, (B, OBS), jnp.float32)
    rnn_hidden_states = jax.random.normal(k_h, (B, HID), jnp.float32)
    masks = jnp.concatenate(
        [jnp.zeros((B // 2, 1), jnp.float32), jnp.ones((B - B // 2, 1), jnp.float32)],
        axis=0,
    )
    params = make_params(k_param, OBS, HID, A)
    packed_params = pack_params(params)   # one-time slab packing (outside hot path)

    out = net_policy_act(packed_params, observations, rnn_hidden_states, masks)
    jax.block_until_ready(out)

    # Shape / dtype / range checks.
    assert out["values"].shape == (B, 1)
    assert out["actions"].shape == (B, 1) and out["actions"].dtype == jnp.int32
    assert out["action_log_probs"].shape == (B, 1)
    assert out["rnn_hidden_states"].shape == (B, HID)
    assert bool(jnp.all(out["actions"] >= 0)) and bool(jnp.all(out["actions"] < A))
    assert bool(jnp.all(out["action_log_probs"] <= 0.0))

    # Numerical check against the pure-JAX reference.
    v_ref, a_ref, lp_ref, h_ref = _reference_act(
        params, observations, rnn_hidden_states, masks)
    assert bool(jnp.allclose(out["values"], v_ref, atol=1e-5, rtol=1e-5))
    assert bool(jnp.allclose(out["rnn_hidden_states"], h_ref, atol=1e-5, rtol=1e-5))
    assert bool(jnp.allclose(out["action_log_probs"], lp_ref, atol=1e-5, rtol=1e-5))
    assert bool(jnp.all(out["actions"] == a_ref))

    print("KERNEL_OK")
</pallas_src>

<mosaic_0001>
module attributes {stable_mosaic.version = 11 : i64} {
  func.func @_net_policy_kernel(%arg0: i32, %arg1: memref<8x32xf32, #tpu.memory_space<vmem>>, %arg2: memref<8x32xf32, #tpu.memory_space<vmem>>, %arg3: memref<8x1xf32, #tpu.memory_space<vmem>>, %arg4: memref<32x32xf32, #tpu.memory_space<vmem>>, %arg5: memref<64x32xf32, #tpu.memory_space<vmem>>, %arg6: memref<32x5xf32, #tpu.memory_space<vmem>>, %arg7: memref<1x384xf32, #tpu.memory_space<vmem>>, %arg8: memref<8x32xf32, #tpu.memory_space<vmem>>, %arg9: memref<8x128xf32, #tpu.memory_space<vmem>>) attributes {dimension_semantics = [#tpu.dimension_semantics<parallel>], iteration_bounds = array<i64: 1>, scalar_prefetch = 0 : i64, scratch_operands = 0 : i64, tpu.core_type = #tpu.core_type<tc>, window_params = [{transform_indices = @transform_0, window_bounds = array<i64: 8, 32>}, {transform_indices = @transform_1, window_bounds = array<i64: 8, 32>}, {transform_indices = @transform_2, window_bounds = array<i64: 8, 1>}, {pipeline_mode = #tpu.pipeline_mode<synchronous>, transform_indices = @transform_3, window_bounds = array<i64: 32, 32>}, {pipeline_mode = #tpu.pipeline_mode<synchronous>, transform_indices = @transform_4, window_bounds = array<i64: 64, 32>}, {pipeline_mode = #tpu.pipeline_mode<synchronous>, transform_indices = @transform_5, window_bounds = array<i64: 32, 5>}, {pipeline_mode = #tpu.pipeline_mode<synchronous>, transform_indices = @transform_6, window_bounds = array<i64: 1, 384>}, {transform_indices = @transform_7, window_bounds = array<i64: 8, 32>}, {transform_indices = @transform_8, window_bounds = array<i64: 8, 128>}]} {
    %c0 = arith.constant 0 : index
    %c0_0 = arith.constant 0 : index
    %0 = vector.load %arg1[%c0, %c0_0] : memref<8x32xf32, #tpu.memory_space<vmem>>, vector<8x32xf32>
    %c0_1 = arith.constant 0 : index
    %c0_2 = arith.constant 0 : index
    %1 = vector.load %arg2[%c0_1, %c0_2] : memref<8x32xf32, #tpu.memory_space<vmem>>, vector<8x32xf32>
    %c0_3 = arith.constant 0 : index
    %c0_4 = arith.constant 0 : index
    %2 = vector.load %arg3[%c0_3, %c0_4] : memref<8x1xf32, #tpu.memory_space<vmem>>, vector<8x1xf32>
    %c0_5 = arith.constant 0 : index
    %c0_6 = arith.constant 0 : index
    %3 = vector.load %arg7[%c0_5, %c0_6] : memref<1x384xf32, #tpu.memory_space<vmem>>, vector<1x32xf32>
    %c0_7 = arith.constant 0 : index
    %c128 = arith.constant 128 : index
    %4 = vector.load %arg7[%c0_7, %c128] : memref<1x384xf32, #tpu.memory_space<vmem>>, vector<1x32xf32>
    %c0_8 = arith.constant 0 : index
    %c256 = arith.constant 256 : index
    %5 = vector.load %arg7[%c0_8, %c256] : memref<1x384xf32, #tpu.memory_space<vmem>>, vector<1x5xf32>
    %c0_9 = arith.constant 0 : index
    %c0_10 = arith.constant 0 : index
    %6 = vector.load %arg4[%c0_9, %c0_10] : memref<32x32xf32, #tpu.memory_space<vmem>>, vector<32x32xf32>
    %cst = arith.constant dense<0.000000e+00> : vector<8x32xf32>
    %7 = tpu.matmul %0, %6, %cst {dimension_numbers = #tpu.dot_dimension_numbers<[1], [0], [0], [1], [0, 0, 1, 1], [], []>} : vector<8x32xf32>, vector<32x32xf32>, vector<8x32xf32> -> vector<8x32xf32>
    %8 = vector.broadcast %3 : vector<1x32xf32> to vector<8x32xf32>
    %9 = arith.addf %7, %8 : vector<8x32xf32>
    %cst_11 = arith.constant 0.000000e+00 : f32
    %10 = vector.broadcast %cst_11 : f32 to vector<8x32xf32>
    %11 = arith.maximumf %9, %10 : vector<8x32xf32>
    %12 = vector.broadcast %2 : vector<8x1xf32> to vector<8x32xf32>
    %13 = arith.mulf %1, %12 : vector<8x32xf32>
    %c0_12 = arith.constant 0 : index
    %c0_13 = arith.constant 0 : index
    %14 = vector.load %arg5[%c0_12, %c0_13] : memref<64x32xf32, #tpu.memory_space<vmem>>, vector<32x32xf32>
    %cst_14 = arith.constant dense<0.000000e+00> : vector<8x32xf32>
    %15 = tpu.matmul %11, %14, %cst_14 {dimension_numbers = #tpu.dot_dimension_numbers<[1], [0], [0], [1], [0, 0, 1, 1], [], []>} : vector<8x32xf32>, vector<32x32xf32>, vector<8x32xf32> -> vector<8x32xf32>
    %c32 = arith.constant 32 : index
    %c0_15 = arith.constant 0 : index
    %16 = vector.load %arg5[%c32, %c0_15] : memref<64x32xf32, #tpu.memory_space<vmem>>, vector<32x32xf32>
    %cst_16 = arith.constant dense<0.000000e+00> : vector<8x32xf32>
    %17 = tpu.matmul %13, %16, %cst_16 {dimension_numbers = #tpu.dot_dimension_numbers<[1], [0], [0], [1], [0, 0, 1, 1], [], []>} : vector<8x32xf32>, vector<32x32xf32>, vector<8x32xf32> -> vector<8x32xf32>
    %18 = arith.addf %15, %17 : vector<8x32xf32>
    %19 = vector.broadcast %4 : vector<1x32xf32> to vector<8x32xf32>
    %20 = arith.addf %18, %19 : vector<8x32xf32>
    %21 = math.tanh %20 : vector<8x32xf32>
    %c0_17 = arith.constant 0 : index
    %c0_18 = arith.constant 0 : index
    %22 = vector.load %arg8[%c0_17, %c0_18] : memref<8x32xf32, #tpu.memory_space<vmem>>, vector<8x32xf32>
    tpu.vector_store %arg8[%c0_17, %c0_18], %21 {strides = array<i32>} : memref<8x32xf32, #tpu.memory_space<vmem>>, vector<8x32xf32>,
    %c0_19 = arith.constant 0 : index
    %c0_20 = arith.constant 0 : index
    %23 = vector.load %arg6[%c0_19, %c0_20] : memref<32x5xf32, #tpu.memory_space<vmem>>, vector<32x5xf32>
    %cst_21 = arith.constant dense<0.000000e+00> : vector<8x5xf32>
    %24 = tpu.matmul %21, %23, %cst_21 {dimension_numbers = #tpu.dot_dimension_numbers<[1], [0], [0], [1], [0, 0, 1, 1], [], []>} : vector<8x32xf32>, vector<32x5xf32>, vector<8x5xf32> -> vector<8x5xf32>
    %25 = vector.broadcast %5 : vector<1x5xf32> to vector<8x5xf32>
    %26 = arith.addf %24, %25 : vector<8x5xf32>
    %27 = vector.extract_strided_slice %26 {offsets = [0, 0], sizes = [8, 4], strides = [1, 1]} : vector<8x5xf32> to vector<8x4xf32>
    %28 = vector.extract_strided_slice %26 {offsets = [0, 4], sizes = [8, 1], strides = [1, 1]} : vector<8x5xf32> to vector<8x1xf32>
    %cst_22 = arith.constant dense<0xFF800000> : vector<8xf32>
    %29 = vector.multi_reduction <maximumf>, %27, %cst_22 [1] : vector<8x4xf32> to vector<8xf32>
    %30 = vector.shape_cast %29 : vector<8xf32> to vector<8x1xf32>
    %31 = vector.broadcast %30 : vector<8x1xf32> to vector<8x4xf32>
    %32 = arith.subf %27, %31 : vector<8x4xf32>
    %33 = math.exp %32 : vector<8x4xf32>
    %cst_23 = arith.constant dense<0.000000e+00> : vector<8xf32>
    %34 = vector.multi_reduction <add>, %33, %cst_23 [1] : vector<8x4xf32> to vector<8xf32>
    %35 = vector.shape_cast %34 : vector<8xf32> to vector<8x1xf32>
    %36 = math.log %35 : vector<8x1xf32>
    %cst_24 = arith.constant 0.000000e+00 : f32
    %37 = vector.broadcast %cst_24 : f32 to vector<8x1xf32>
    %38 = arith.subf %37, %36 : vector<8x1xf32>
    %39 = tpu.iota {dimensions = array<i32: 1>} : vector<8x4xi32>
    %40 = vector.broadcast %30 : vector<8x1xf32> to vector<8x4xf32>
    %41 = arith.cmpf oeq, %27, %40 : vector<8x4xf32>
    %c1073741824_i32 = arith.constant 1073741824 : i32
    %42 = vector.broadcast %c1073741824_i32 : i32 to vector<8x4xi32>
    %43 = arith.select %41, %39, %42 : vector<8x4xi1>, vector<8x4xi32>
    %cst_25 = arith.constant dense<2147483647> : vector<8xi32>
    %44 = vector.multi_reduction <minsi>, %43, %cst_25 [1] : vector<8x4xi32> to vector<8xi32>
    %45 = vector.shape_cast %44 : vector<8xi32> to vector<8x1xi32>
    %46 = arith.sitofp %45 : vector<8x1xi32> to vector<8x1xf32>
    %47 = tpu.iota {dimensions = array<i32: 1>} : vector<8x128xi32>
    %c0_i32 = arith.constant 0 : i32
    %48 = vector.broadcast %c0_i32 : i32 to vector<8x128xi32>
    %49 = arith.cmpi eq, %47, %48 : vector<8x128xi32>
    %c1_i32 = arith.constant 1 : i32
    %50 = vector.broadcast %c1_i32 : i32 to vector<8x128xi32>
    %51 = arith.cmpi eq, %47, %50 : vector<8x128xi32>
    %c2_i32 = arith.constant 2 : i32
    %52 = vector.broadcast %c2_i32 : i32 to vector<8x128xi32>
    %53 = arith.cmpi eq, %47, %52 : vector<8x128xi32>
    %cst_26 = arith.constant 0.000000e+00 : f32
    %54 = vector.shape_cast %46 : vector<8x1xf32> to vector<8x1xf32>
    %55 = vector.broadcast %54 : vector<8x1xf32> to vector<8x128xf32>
    %56 = vector.broadcast %cst_26 : f32 to vector<8x128xf32>
    %57 = arith.select %53, %55, %56 : vector<8x128xi1>, vector<8x128xf32>
    %58 = vector.shape_cast %38 : vector<8x1xf32> to vector<8x1xf32>
    %59 = vector.broadcast %58 : vector<8x1xf32> to vector<8x128xf32>
    %60 = arith.select %51, %59, %57 : vector<8x128xi1>, vector<8x128xf32>
    %61 = vector.shape_cast %28 : vector<8x1xf32> to vector<8x1xf32>
    %62 = vector.broadcast %61 : vector<8x1xf32> to vector<8x128xf32>
    %63 = arith.select %49, %62, %60 : vector<8x128xi1>, vector<8x128xf32>
    %c0_27 = arith.constant 0 : index
    %c0_28 = arith.constant 0 : index
    %64 = vector.load %arg9[%c0_27, %c0_28] : memref<8x128xf32, #tpu.memory_space<vmem>>, vector<8x128xf32>
    tpu.vector_store %arg9[%c0_27, %c0_28], %63 {strides = array<i32>} : memref<8x128xf32, #tpu.memory_space<vmem>>, vector<8x128xf32>,
    return
  }
  func.func @transform_0(%arg0: i32) -> (i32, i32) {
    %c0_i32 = arith.constant 0 : i32
    %c0_i32_0 = arith.constant 0 : i32
    return %arg0, %c0_i32 : i32, i32
  }
  func.func @transform_1(%arg0: i32) -> (i32, i32) {
    %c0_i32 = arith.constant 0 : i32
    %c0_i32_0 = arith.constant 0 : i32
    return %arg0, %c0_i32 : i32, i32
  }
  func.func @transform_2(%arg0: i32) -> (i32, i32) {
    %c0_i32 = arith.constant 0 : i32
    %c0_i32_0 = arith.constant 0 : i32
    return %arg0, %c0_i32 : i32, i32
  }
  func.func @transform_3(%arg0: i32) -> (i32, i32) {
    %c0_i32 = arith.constant 0 : i32
    %c0_i32_0 = arith.constant 0 : i32
    %c0_i32_1 = arith.constant 0 : i32
    return %c0_i32, %c0_i32_0 : i32, i32
  }
  func.func @transform_4(%arg0: i32) -> (i32, i32) {
    %c0_i32 = arith.constant 0 : i32
    %c0_i32_0 = arith.constant 0 : i32
    %c0_i32_1 = arith.constant 0 : i32
    return %c0_i32, %c0_i32_0 : i32, i32
  }
  func.func @transform_5(%arg0: i32) -> (i32, i32) {
    %c0_i32 = arith.constant 0 : i32
    %c0_i32_0 = arith.constant 0 : i32
    %c0_i32_1 = arith.constant 0 : i32
    return %c0_i32, %c0_i32_0 : i32, i32
  }
  func.func @transform_6(%arg0: i32) -> (i32, i32) {
    %c0_i32 = arith.constant 0 : i32
    %c0_i32_0 = arith.constant 0 : i32
    %c0_i32_1 = arith.constant 0 : i32
    return %c0_i32, %c0_i32_0 : i32, i32
  }
  func.func @transform_7(%arg0: i32) -> (i32, i32) {
    %c0_i32 = arith.constant 0 : i32
    %c0_i32_0 = arith.constant 0 : i32
    return %arg0, %c0_i32 : i32, i32
  }
  func.func @transform_8(%arg0: i32) -> (i32, i32) {
    %c0_i32 = arith.constant 0 : i32
    %c0_i32_0 = arith.constant 0 : i32
    return %arg0, %c0_i32 : i32, i32
  }
}

</mosaic_0001>

<bundles_post_ra>
// kernel: tpu_custom_call.1
= control target key start
LH: loop header
LB: loop body
LE: loop exit
PB: predicated region body
PF: predicated region fallthrough
CT: control target
= control target key end

     0   :  { %14 = vsyncpa [#allocation3], 0  ;;  %v576_v1 = vmov 0.0   ;;  %vm577_vm0 = vmmov 0   ;;  %v578_v4 = vmov 0   ;;  %s731_s0 = inlined_call_operand.vmem [shape: f32[8,32], index: 0, kind: input, shape index: {}]   ;;  %s732_s1 = inlined_call_operand.vmem [shape: f32[8,32], index: 1, kind: input, shape index: {}]   ;;  %s733_s2 = inlined_call_operand.vmem [shape: f32[8,1], index: 2, kind: input, shape index: {}]   ;;  %s734_s3 = inlined_call_operand.vmem [shape: f32[32,32], index: 3, kind: input, shape index: {}]   ;;  %s735_s4 = inlined_call_operand.vmem [shape: f32[64,32], index: 4, kind: input, shape index: {}]   ;;  %s736_s5 = inlined_call_operand.vmem [shape: f32[32,5], index: 5, kind: input, shape index: {}]   ;;  %s737_s6 = inlined_call_operand.vmem [shape: f32[1,384], index: 6, kind: input, shape index: {}]   ;;  %s738_s7 = inlined_call_operand.hbm [shape: f32[8,32], index: 7, kind: output, shape index: {0}]   ;;  %s739_s8 = inlined_call_operand.hbm [shape: f32[8,128], index: 8, kind: output, shape index: {1}]  }
   0x1   :  { %v39_v0 = vld [vmem:[%s734_s3 + $0x18] sm:$0xff]  ;;  %473 = vmatprep.subr.mxu0 %v576_v1  ;;  %v38_v2 = vld [vmem:[%s734_s3 + $0x10] sm:$0xff]  ;;  %481 = vmatprep.mubr.msk.f32.mxu0 %vm577_vm0, %v576_v1  ;;  %v32_v3 = vld [vmem:[%s733_s2] sm:$0xff] }
   0x2   :  { %474 = vmatpush3.msra.mxu0 %v39_v0  ;;  %523 = vset.pattern.permute.xlu0 %v578_v4  ;;  %v134_v5 = vld [vmem:[%s735_s4 + $0x38] sm:$0xff]  ;;  %v37_v6 = vld [vmem:[%s734_s3 + $0x8] sm:$0xff]  ;;  %v133_v7 = vld [vmem:[%s735_s4 + $0x30] sm:$0xff] }
   0x3   :  { %475 = vmatprep.subr.mxu0 %v576_v1  ;;  %123 = vperm.xlu0 %523, %v32_v3  }
   0x4   :  { %476 = vmatpush3.msra.mxu0 %v38_v2  ;;  %484 = vmatprep.subr.mxu1 %v576_v1 }
   0x5   :  { %15 = vsyncpa [#allocation5], 0  ;;  %477 = vmatprep.subr.mxu0 %v576_v1  ;;  %v36_v8 = vld [vmem:[%s734_s3] sm:$0xff]  ;;  %485 = vmatpush3.msra.mxu1 %v134_v5  ;;  %vm46_vm1 = vcmask 261120   ;;  %v130_v10 = vld [vmem:[%s735_s4 + $0x18] sm:$0xff]  ;;  %vm373_vm2 = vcmask 31744   ;;  %v386_v41 = vlaneseq }
   0x6   :  { %478 = vmatpush3.msra.mxu0 %v37_v6  ;;  %v30_v9 = vld [vmem:[%s731_s0] sm:$0xff]  ;;  %486 = vmatprep.subr.mxu1 %v576_v1  ;;  %v132_v11 = vld [vmem:[%s735_s4 + $0x28] sm:$0xff]  ;;  %v129_v12 = vld [vmem:[%s735_s4 + $0x10] sm:$0xff]  ;;  %v579_v52 = vmov 4  }
   0x7   :  { %479 = vmatprep.subr.mxu0 %v576_v1  ;;  %487 = vmatpush3.msra.mxu1 %v133_v7  ;;  %v131_v13 = vld [vmem:[%s735_s4 + $0x20] sm:$0xff]  ;;  %v128_v14 = vld [vmem:[%s735_s4 + $0x8] sm:$0xff]  ;;  %v293_v24 = vld [vmem:[%s736_s5 + $0x18] sm:$0xff]  ;;  %v387_v42 = vand.u32 127, %v386_v41 }
   0x8   :  { %480 = vmatpush3.msra.mxu0 %v36_v8  ;;  %488 = vmatprep.subr.mxu1 %v576_v1  ;;  %v127_v15 = vld [vmem:[%s735_s4] sm:$0xff]  ;;  %v292_v25 = vld [vmem:[%s736_s5 + $0x10] sm:$0xff]  ;;  %v291_v26 = vld [vmem:[%s736_s5 + $0x8] sm:$0xff] }
   0x9   :  { %482 = vmatmul.mubr.msk.f32.vlgmr.msra.gmra.mxu0 %vm46_vm1, %v30_v9  ;;  %495 = vmatprep.subr.mxu0 %v576_v1  ;;  %v31_v16 = vld [vmem:[%s732_s1] sm:$0xff] }
   0xa   :  { %496 = vmatpush3.msra.mxu0 %v130_v10  ;;  %489 = vmatpush3.msra.mxu1 %v132_v11  ;;  %v446_v19 = vld [vmem:[%s737_s6] ss:$0 sm:$0xff]  ;;  %v450_v30 = vld [vmem:[%s737_s6 + $0x1] ss:$0 sm:$0xff]  ;;  %v451_v36 = vld [vmem:[%s737_s6 + $0x2] ss:$0 sm:$0xff] }
   0xb   :  { %497 = vmatprep.subr.mxu0 %v576_v1  ;;  %490 = vmatprep.subr.mxu1 %v576_v1  ;;  %v290_v27 = vld [vmem:[%s736_s5] sm:$0xff]  ;;  %s580_s5 = smov [#allocation2]  }
   0xc   :  { %492 = vmatprep.mubr.msk.f32.mxu1 %vm577_vm0, %v576_v1  ;;  %503 = vmatprep.mubr.msk.f32.mxu0 %vm577_vm0, %v576_v1  ;;  %s424_s6 = sshll.u32 %s580_s5, 4  ;;  %s425_s6 = int_to_ptr.vmem [resolvable:$true] %s424_s6 }
   0xd   :  { %498 = vmatpush3.msra.mxu0 %v129_v12  ;;  %491 = vmatpush3.msra.mxu1 %v131_v13  ;;  %s532_s21 = scalar_lea.vmem %s425_s6, 128  ;;  %p537_p1 = scmp.lt.s32.totalorder %s425_s6, %s425_s6 }
   0xe   :  { %499 = vmatprep.subr.mxu0 %v576_v1  ;;  %506 = vmatprep.subr.mxu1 %v576_v1  ;;  %p533_p0 = scmp.ne.s32.totalorder %s425_s6, %s532_s21  ;;  %p538_p2 = scmp.lt.s32.totalorder %s532_s21, %s532_s21 }
   0xf   :  { %500 = vmatpush3.msra.mxu0 %v128_v14  ;;  %524 = vset.pattern.permute.xlu1 %v579_v52 }
  0x10   :  { %501 = vmatprep.subr.mxu0 %v576_v1  ;;  %525 = vset.pattern.permute.xlu0 %v579_v52  ;;  %p539_p3 = por %p538_p2, %p537_p1 }
  0x11   :  { %502 = vmatpush3.msra.mxu0 %v127_v15 }
  0x12   :  { %p540_p4 = pnand %p539_p3, %p533_p0 }
  0x7e   :  { %v124_v17 = vpop.permute.xlu0 %123 }
  0x7f   :  { %v126_v18 = vmul.f32 %v124_v17, %v31_v16 }
  0x81   :  { %493 = vmatmul.mubr.msk.f32.vlgmr.msra.gmra.mxu1 %vm46_vm1, %v126_v18 }
  0x82   :  { %514 = vmatprep.mubr.msk.f32.mxu1 %vm577_vm0, %v576_v1  ;;  %507 = vmatpush3.msra.mxu1 %v293_v24 }
  0x83   :  { %508 = vmatprep.subr.mxu1 %v576_v1 }
  0x84   :  { %509 = vmatpush3.msra.mxu1 %v292_v25 }
  0x85   :  { %510 = vmatprep.subr.mxu1 %v576_v1 }
  0x86   :  { %511 = vmatpush3.msra.mxu1 %v291_v26 }
  0x87   :  { %512 = vmatprep.subr.mxu1 %v576_v1 }
  0x88   :  { %513 = vmatpush3.msra.mxu1 %v290_v27 }
  0xc9   :  { %v116_v20 = vpop.f32.mrf.mxu0 }
  0xca   :  { %v117_v21 = vadd.f32 %v446_v19, %v116_v20 }
  0xcb   :  { %v483_v22 = vpop.f32.mrf.mxu0 }
  0xcc   :  { %v120_v23 = vmax.f32 %v117_v21, 0.0 }
  0xce   :  { %504 = vmatmul.mubr.msk.f32.vlgmr.msra.gmra.mxu0 %vm46_vm1, %v120_v23 }
 0x141   :  { %v204_v28 = vpop.f32.mrf.mxu1 }
 0x143   :  { %v494_v29 = vpop.f32.mrf.mxu1 }
 0x18e   :  { %v277_v31 = vpop.f32.mrf.mxu0 }
 0x18f   :  { %v278_v32 = vadd.f32 %v277_v31, %v204_v28 }
 0x190   :  { %v505_v33 = vpop.f32.mrf.mxu0 }
 0x191   :  { %v287_v34 = vadd.f32 %v450_v30, %v278_v32 }
 0x193   :  { %526 = vtanh.f32 %v287_v34 }
 0x1a0   :  { %v527_v35 = vpop.eup %526 }
 0x1a1   :  { %289 = vst.msk [vmem:[#allocation2] sm:$0xff] %vm46_vm1, %v527_v35  ;;  %515 = vmatmul.mubr.msk.f32.vlgmr.msra.gmra.mxu1 %vm46_vm1, %v527_v35 }
 0x261   :  { %v369_v37 = vpop.f32.mrf.mxu1 }
 0x262   :  { %v370_v38 = vadd.f32 %v451_v36, %v369_v37 }
 0x263   :  { %v516_v39 = vpop.f32.mrf.mxu1 }
 0x264   :  { %v374_v40 = vsel %vm373_vm2, %v370_v38, -inf }
 0x265   :  { %375 = vmax.xlane.f32.xlu0 %v374_v40 }
 0x2ee   :  { %v376_v43 = vpop.xlane.xlu0 %375 }
 0x2ef   :  { %v377_v44 = vsub.f32 %v370_v38, %v376_v43  ;;  %vm388_vm3 = vcmp.eq.f32.partialorder %v370_v38, %v376_v43 }
 0x2f0   :  { %v389_v45 = vsel %vm388_vm3, %v387_v42, 1073741824 }
 0x2f1   :  { %v378_v46 = vmul.f32 1.442695, %v377_v44  ;;  %v390_v47 = vsel %vm373_vm2, %v389_v45, 2147483647 }
 0x2f2   :  { %v392_v48 = vshra.s32 %v390_v47, 16  ;;  %v391_v53 = vand.u32 65535, %v390_v47 }
 0x2f3   :  { %528 = vpow2.f32 %v378_v46 }
 0x2f4   :  { %v394_v49 = vcvt.s32.f32 %v392_v48  ;;  %v393_v55 = vcvt.s32.f32 %v391_v53 }
 0x2f6   :  { %395 = vmin.xlane.f32.xlu1 %v394_v49 }
 0x300   :  { %v529_v50 = vpop.eup %528 }
 0x301   :  { %v380_v51 = vsel %vm373_vm2, %v529_v50, 0.0 }
 0x302   :  { %381 = vadd.xlane.f32.xlu1 %v380_v51 }
 0x37f   :  { %v396_v54 = vpop.xlane.xlu1 %395 }
 0x380   :  { %vm397_vm4 = vcmp.eq.f32.partialorder %v394_v49, %v396_v54 }
 0x381   :  { %v398_v56 = vsel %vm397_vm4, %v393_v55, inf }
 0x382   :  { %399 = vmin.xlane.f32.xlu1 %v398_v56 }
 0x393   :  { %413 = vperm.xlu1 %524, %v370_v38  }
 0x394   :  { %543 = shalt.err (!%p540_p4)
}
 0x395   :  { %427 = dma.vmem_to_hbm [thread:$0]  %s425_s6, 128, %s738_s7, [#allocation3]   ;;  %v382_v57 = vpop.xlane.xlu1 %381  ;;  %v402_v58 = vcvt.f32.s32 %v396_v54  ;;  %vm408_vm5 = vcmp.eq.s32.totalorder %v387_v42, 2  ;;  %vm407_vm6 = vcmp.eq.s32.totalorder %v387_v42, 1  ;;  %vm406_vm7 = vcmp.eq.s32.totalorder %v387_v42, 0 }
 0x396   :  { %530 = vlog2.f32 %v382_v57  ;;  %s581_s0 = smov [#allocation4]  }
 0x397   :  { %v403_v61 = vshll.u32 %v402_v58, 16  ;;  %s434_s3 = sshll.u32 %s581_s0, 4  ;;  %s435_s3 = int_to_ptr.vmem [resolvable:$true] %s434_s3 }
 0x398   :  { %s552_s7 = scalar_lea.vmem %s435_s3, 128  ;;  %p557_p6 = scmp.lt.s32.totalorder %s435_s3, %s435_s3 }
 0x399   :  { %p553_p5 = scmp.ne.s32.totalorder %s435_s3, %s552_s7  ;;  %p558_p7 = scmp.lt.s32.totalorder %s552_s7, %s552_s7 }
 0x39b   :  { %p559_p8 = por %p558_p7, %p557_p6 }
 0x39d   :  { %p560_p9 = pnand %p559_p8, %p553_p5 }
 0x3a3   :  { %v531_v59 = vpop.eup %530 }
 0x3a4   :  { %v384_v63 = vmul.f32 0.6931472, %v531_v59 }
 0x3a6   :  { %v385_v2 = vsub.f32 0.0, %v384_v63 }
 0x40b   :  { %v400_v60 = vpop.xlane.xlu1 %399 }
 0x40c   :  { %v401_v62 = vcvt.f32.s32 %v400_v60 }
 0x40e   :  { %v404_v0 = vadd.s32 %v403_v61, %v401_v62 }
 0x40f   :  { %v414_v5 = vpop.permute.xlu1 %413 }
 0x410   :  { %v405_v1 = vcvt.s32.f32 %v404_v0 }
 0x412   :  { %v409_v3 = vsel %vm408_vm5, %v405_v1, 0.0 }
 0x413   :  { %v410_v4 = vsel %vm407_vm6, %v385_v2, %v409_v3 }
 0x414   :  { %v416_v6 = vsel %vm406_vm7, %v414_v5, %v410_v4 }
 0x415   :  { %417 = vst [vmem:[#allocation4] sm:$0xff] %v416_v6 }
 0x416   :  { %563 = shalt.err (!%p560_p9)
}
 0x417   :  { %437 = dma.vmem_to_hbm [thread:$0]  %s435_s3, 128, %s739_s8, [#allocation5]  }
 0x418   :  { %572 = dma.done.wait [#allocation3], 128  }
 0x419   :  { %573 = vsyncadd [#allocation3], 4294967168 }
 0x41a   :  { %574 = dma.done.wait [#allocation5], 128  }
 0x41b   :  { %575 = vsyncadd [#allocation5], 4294967168 }
 0x41c   :  { %444 = vsyncpa [#allocation3], 1 }
 0x41d   :  { %445 = vsyncpa [#allocation5], 1 }

</bundles_post_ra>
